<compile_context>
chip_gen: v7x
topology: tpu7x:2x2x1
jax: 0.10.0
libtpu: 0.0.40
codegen_flags: <defaults>
</compile_context>

<pallas_src>
import jax
import jax.numpy as jnp
from jax.experimental import pallas as pl
from jax.experimental.pallas import tpu as pltpu

NEG_SLOPE = 0.01
IN_DIM = 784
HID = 200
OUT = 10
HID_PAD = 256   # MXU / lane aligned hidden width (padded cols are exactly zero)
OUT_PAD = 128   # lane-dense output width (padded cols are exactly zero)
TILE_B = 1024   # max batch tile (review: 512-1024 hits ~85% of HBM roofline)


def _leaky_relu(x):
    # max(x, 0.01*x) == LeakyReLU(0.01) for all x (one fewer VALU op than where()).
    return jnp.maximum(x, NEG_SLOPE * x)


def mlp_kernel(x_ref, w1_ref, b1_ref, w2_ref, b2_ref, w3_ref, b3_ref, out_ref):
    # bf16 operands into the MXU, f32 accumulation; bias add + LeakyReLU in f32.
    x = x_ref[...]                                                        # bf16 (tb, 784)
    h = jnp.dot(x, w1_ref[...], preferred_element_type=jnp.float32)      # (tb, 256)
    h = _leaky_relu(h + b1_ref[...])
    h = jnp.dot(h.astype(jnp.bfloat16), w2_ref[...],
                preferred_element_type=jnp.float32)                      # (tb, 256)
    h = _leaky_relu(h + b2_ref[...])
    h = jnp.dot(h.astype(jnp.bfloat16), w3_ref[...],
                preferred_element_type=jnp.float32)                      # (tb, 128)
    h = _leaky_relu(h + b3_ref[...])
    out_ref[...] = h.astype(out_ref.dtype)                               # bf16 store


def _choose_tiling(batch, max_tile=TILE_B):
    """Return (tile_b, padded_batch); tile_b is a multiple of 16 (bf16 sublane pack)."""
    b_sub = ((batch + 15) // 16) * 16
    if b_sub <= max_tile:
        # Small batch: size the tile to the batch (no 256-row over-padding).
        # Split in two when there are enough rows so v7x's second TC gets work.
        if b_sub >= 512 and (b_sub // 2) % 16 == 0:
            return b_sub // 2, b_sub
        return b_sub, b_sub
    # Large batch: largest multiple-of-16 tile <= max_tile that divides the
    # (sublane-padded) batch -> avoids a full-array jnp.pad copy.
    for tile in range(max_tile, 255, -16):
        if b_sub % tile == 0:
            return tile, b_sub
    # Fallback: pad up to a multiple of 512 (pad waste bounded by one tile).
    tile = 512
    return tile, ((b_sub + tile - 1) // tile) * tile


def mlp_forward(x, padded_params, *, max_tile=TILE_B):
    """x: (B, 784) float.  padded_params from prepare_params().  Returns (B, 10) f32."""
    w1, b1, w2, b2, w3, b3 = padded_params
    B = x.shape[0]
    tile_b, b_pad = _choose_tiling(B, max_tile)
    if b_pad != B:
        x = jnp.pad(x, ((0, b_pad - B), (0, 0)))
    if x.dtype != jnp.bfloat16:
        # Convert right at the call boundary; allow_input_fusion lets XLA fuse it
        # into the pallas_call input DMA instead of a standalone HBM pass.
        x = x.astype(jnp.bfloat16)
    grid = (b_pad // tile_b,)

    def resident(shape):
        # Weight/bias blocks: full array, same block every grid step -> stays in VMEM.
        return pl.BlockSpec(shape, lambda i: (0,) * len(shape))

    flops = 2 * b_pad * (IN_DIM * HID_PAD + HID_PAD * HID_PAD + HID_PAD * OUT_PAD)
    bytes_accessed = (
        b_pad * IN_DIM * 2                                               # x (bf16)
        + b_pad * OUT_PAD * 2                                            # out (bf16)
        + (IN_DIM * HID_PAD + HID_PAD * HID_PAD + HID_PAD * OUT_PAD) * 2 # weights (bf16)
        + (HID_PAD + HID_PAD + OUT_PAD) * 4                              # biases (f32)
    )

    out = pl.pallas_call(
        mlp_kernel,
        out_shape=jax.ShapeDtypeStruct((b_pad, OUT_PAD), jnp.bfloat16),
        grid=grid,
        in_specs=[
            pl.BlockSpec((tile_b, IN_DIM), lambda i: (i, 0)),
            resident(w1.shape), resident(b1.shape),
            resident(w2.shape), resident(b2.shape),
            resident(w3.shape), resident(b3.shape),
        ],
        out_specs=pl.BlockSpec((tile_b, OUT_PAD), lambda i: (i, 0)),
        compiler_params=pltpu.CompilerParams(
            dimension_semantics=("parallel",),
            vmem_limit_bytes=32 << 20,
            allow_input_fusion=[True, False, False, False, False, False, False],
        ),
        cost_estimate=pl.CostEstimate(
            flops=flops, transcendentals=0, bytes_accessed=bytes_accessed),
    )(x, w1, b1, w2, b2, w3, b3)
    # f32 only on the tiny useful slice; the kernel writeback stays bf16.
    return out[:B, :OUT].astype(jnp.float32)


def init_params(key):
    # Mimic nn.Linear's U(-1/sqrt(in), 1/sqrt(in)); weights stored (in, out) so the
    # kernel's x @ W + b equals torch's x @ W.T + b.
    def linear(key, fan_in, fan_out):
        kw, kb = jax.random.split(key)
        bound = 1.0 / jnp.sqrt(fan_in)
        w = jax.random.uniform(kw, (fan_in, fan_out), jnp.float32, -bound, bound)
        b = jax.random.uniform(kb, (1, fan_out), jnp.float32, -bound, bound)
        return w, b

    k1, k2, k3 = jax.random.split(key, 3)
    w1, b1 = linear(k1, IN_DIM, HID)
    w2, b2 = linear(k2, HID, HID)
    w3, b3 = linear(k3, HID, OUT)
    return (w1, b1, w2, b2, w3, b3)


def prepare_params(params):
    """Zero-pad to MXU-aligned widths and cast weights to bf16 (once, outside the kernel)."""
    w1, b1, w2, b2, w3, b3 = params
    w1p = jnp.zeros((IN_DIM, HID_PAD), jnp.bfloat16).at[:, :HID].set(w1.astype(jnp.bfloat16))
    b1p = jnp.zeros((1, HID_PAD), jnp.float32).at[:, :HID].set(b1)
    w2p = jnp.zeros((HID_PAD, HID_PAD), jnp.bfloat16).at[:HID, :HID].set(w2.astype(jnp.bfloat16))
    b2p = jnp.zeros((1, HID_PAD), jnp.float32).at[:, :HID].set(b2)
    w3p = jnp.zeros((HID_PAD, OUT_PAD), jnp.bfloat16).at[:HID, :OUT].set(w3.astype(jnp.bfloat16))
    b3p = jnp.zeros((1, OUT_PAD), jnp.float32).at[:, :OUT].set(b3)
    return (w1p, b1p, w2p, b2p, w3p, b3p)


def reference_forward_f32(x, params):
    w1, b1, w2, b2, w3, b3 = params
    h = _leaky_relu(x @ w1 + b1)
    h = _leaky_relu(h @ w2 + b2)
    return _leaky_relu(h @ w3 + b3)


def reference_forward_bf16(x, padded_params):
    # Mirrors the kernel arithmetic exactly (bf16 operands, f32 accumulation,
    # f32 elementwise, bf16 output rounding).
    w1, b1, w2, b2, w3, b3 = padded_params
    xb = x.astype(jnp.bfloat16)
    h = _leaky_relu(jnp.dot(xb, w1, preferred_element_type=jnp.float32) + b1)
    h = _leaky_relu(jnp.dot(h.astype(jnp.bfloat16), w2,
                            preferred_element_type=jnp.float32) + b2)
    h = _leaky_relu(jnp.dot(h.astype(jnp.bfloat16), w3,
                            preferred_element_type=jnp.float32) + b3)
    return h.astype(jnp.bfloat16)[:, :OUT].astype(jnp.float32)


if __name__ == "__main__":
    key = jax.random.PRNGKey(0)
    kx, kp = jax.random.split(key)
    batch = 8
    x = jax.random.normal(kx, (batch, IN_DIM), jnp.float32)

    params = init_params(kp)
    padded_params = prepare_params(params)

    out = mlp_forward(x, padded_params)
    jax.block_until_ready(out)
    assert out.shape == (batch, OUT)

    # Strict check vs. a reference that mirrors the kernel's mixed precision.
    ref_mixed = reference_forward_bf16(x, padded_params)
    assert jnp.allclose(out, ref_mixed, atol=1e-2, rtol=1e-2), \
        float(jnp.max(jnp.abs(out - ref_mixed)))

    # Loose check vs. the full-f32 PyTorch-equivalent forward (bf16 rounding only).
    ref_f32 = reference_forward_f32(x, params)
    assert jnp.allclose(out, ref_f32, atol=5e-2, rtol=5e-2), \
        float(jnp.max(jnp.abs(out - ref_f32)))

    print("KERNEL_OK")
</pallas_src>

<mosaic_0001>
module attributes {stable_mosaic.version = 11 : i64} {
  func.func @mlp_kernel(%arg0: i32, %arg1: memref<16x784xbf16, #tpu.memory_space<vmem>>, %arg2: memref<784x256xbf16, #tpu.memory_space<vmem>>, %arg3: memref<1x256xf32, #tpu.memory_space<vmem>>, %arg4: memref<256x256xbf16, #tpu.memory_space<vmem>>, %arg5: memref<1x256xf32, #tpu.memory_space<vmem>>, %arg6: memref<256x128xbf16, #tpu.memory_space<vmem>>, %arg7: memref<1x128xf32, #tpu.memory_space<vmem>>, %arg8: memref<16x128xbf16, #tpu.memory_space<vmem>>) attributes {dimension_semantics = [#tpu.dimension_semantics<parallel>], iteration_bounds = array<i64: 1>, scalar_prefetch = 0 : i64, scratch_operands = 0 : i64, tpu.core_type = #tpu.core_type<tc>, window_params = [{transform_indices = @transform_0, window_bounds = array<i64: 16, 784>}, {pipeline_mode = #tpu.pipeline_mode<synchronous>, transform_indices = @transform_1, window_bounds = array<i64: 784, 256>}, {pipeline_mode = #tpu.pipeline_mode<synchronous>, transform_indices = @transform_2, window_bounds = array<i64: 1, 256>}, {pipeline_mode = #tpu.pipeline_mode<synchronous>, transform_indices = @transform_3, window_bounds = array<i64: 256, 256>}, {pipeline_mode = #tpu.pipeline_mode<synchronous>, transform_indices = @transform_4, window_bounds = array<i64: 1, 256>}, {pipeline_mode = #tpu.pipeline_mode<synchronous>, transform_indices = @transform_5, window_bounds = array<i64: 256, 128>}, {pipeline_mode = #tpu.pipeline_mode<synchronous>, transform_indices = @transform_6, window_bounds = array<i64: 1, 128>}, {transform_indices = @transform_7, window_bounds = array<i64: 16, 128>}]} {
    %c0 = arith.constant 0 : index
    %c0_0 = arith.constant 0 : index
    %0 = vector.load %arg1[%c0, %c0_0] : memref<16x784xbf16, #tpu.memory_space<vmem>>, vector<16x784xbf16>
    %c0_1 = arith.constant 0 : index
    %c0_2 = arith.constant 0 : index
    %1 = vector.load %arg2[%c0_1, %c0_2] : memref<784x256xbf16, #tpu.memory_space<vmem>>, vector<784x256xbf16>
    %cst = arith.constant dense<0.000000e+00> : vector<16x256xf32>
    %2 = tpu.matmul %0, %1, %cst {dimension_numbers = #tpu.dot_dimension_numbers<[1], [0], [0], [1], [0, 0, 1, 1], [], []>} : vector<16x784xbf16>, vector<784x256xbf16>, vector<16x256xf32> -> vector<16x256xf32>
    %c0_3 = arith.constant 0 : index
    %c0_4 = arith.constant 0 : index
    %3 = vector.load %arg3[%c0_3, %c0_4] : memref<1x256xf32, #tpu.memory_space<vmem>>, vector<1x256xf32>
    %4 = vector.broadcast %3 : vector<1x256xf32> to vector<16x256xf32>
    %5 = arith.addf %2, %4 : vector<16x256xf32>
    %cst_5 = arith.constant 0.00999999977 : f32
    %6 = vector.broadcast %cst_5 : f32 to vector<16x256xf32>
    %7 = arith.mulf %6, %5 : vector<16x256xf32>
    %8 = arith.maximumf %5, %7 : vector<16x256xf32>
    %9 = arith.truncf %8 : vector<16x256xf32> to vector<16x256xbf16>
    %c0_6 = arith.constant 0 : index
    %c0_7 = arith.constant 0 : index
    %10 = vector.load %arg4[%c0_6, %c0_7] : memref<256x256xbf16, #tpu.memory_space<vmem>>, vector<256x256xbf16>
    %cst_8 = arith.constant dense<0.000000e+00> : vector<16x256xf32>
    %11 = tpu.matmul %9, %10, %cst_8 {dimension_numbers = #tpu.dot_dimension_numbers<[1], [0], [0], [1], [0, 0, 1, 1], [], []>} : vector<16x256xbf16>, vector<256x256xbf16>, vector<16x256xf32> -> vector<16x256xf32>
    %c0_9 = arith.constant 0 : index
    %c0_10 = arith.constant 0 : index
    %12 = vector.load %arg5[%c0_9, %c0_10] : memref<1x256xf32, #tpu.memory_space<vmem>>, vector<1x256xf32>
    %13 = vector.broadcast %12 : vector<1x256xf32> to vector<16x256xf32>
    %14 = arith.addf %11, %13 : vector<16x256xf32>
    %cst_11 = arith.constant 0.00999999977 : f32
    %15 = vector.broadcast %cst_11 : f32 to vector<16x256xf32>
    %16 = arith.mulf %15, %14 : vector<16x256xf32>
    %17 = arith.maximumf %14, %16 : vector<16x256xf32>
    %18 = arith.truncf %17 : vector<16x256xf32> to vector<16x256xbf16>
    %c0_12 = arith.constant 0 : index
    %c0_13 = arith.constant 0 : index
    %19 = vector.load %arg6[%c0_12, %c0_13] : memref<256x128xbf16, #tpu.memory_space<vmem>>, vector<256x128xbf16>
    %cst_14 = arith.constant dense<0.000000e+00> : vector<16x128xf32>
    %20 = tpu.matmul %18, %19, %cst_14 {dimension_numbers = #tpu.dot_dimension_numbers<[1], [0], [0], [1], [0, 0, 1, 1], [], []>} : vector<16x256xbf16>, vector<256x128xbf16>, vector<16x128xf32> -> vector<16x128xf32>
    %c0_15 = arith.constant 0 : index
    %c0_16 = arith.constant 0 : index
    %21 = vector.load %arg7[%c0_15, %c0_16] : memref<1x128xf32, #tpu.memory_space<vmem>>, vector<1x128xf32>
    %22 = vector.broadcast %21 : vector<1x128xf32> to vector<16x128xf32>
    %23 = arith.addf %20, %22 : vector<16x128xf32>
    %cst_17 = arith.constant 0.00999999977 : f32
    %24 = vector.broadcast %cst_17 : f32 to vector<16x128xf32>
    %25 = arith.mulf %24, %23 : vector<16x128xf32>
    %26 = arith.maximumf %23, %25 : vector<16x128xf32>
    %27 = arith.truncf %26 : vector<16x128xf32> to vector<16x128xbf16>
    %c0_18 = arith.constant 0 : index
    %c0_19 = arith.constant 0 : index
    %28 = vector.load %arg8[%c0_18, %c0_19] : memref<16x128xbf16, #tpu.memory_space<vmem>>, vector<16x128xbf16>
    tpu.vector_store %arg8[%c0_18, %c0_19], %27 {strides = array<i32>} : memref<16x128xbf16, #tpu.memory_space<vmem>>, vector<16x128xbf16>,
    return
  }
  func.func @transform_0(%arg0: i32) -> (i32, i32) {
    %c0_i32 = arith.constant 0 : i32
    %c0_i32_0 = arith.constant 0 : i32
    return %arg0, %c0_i32 : i32, i32
  }
  func.func @transform_1(%arg0: i32) -> (i32, i32) {
    %c0_i32 = arith.constant 0 : i32
    %c0_i32_0 = arith.constant 0 : i32
    %c0_i32_1 = arith.constant 0 : i32
    return %c0_i32, %c0_i32_0 : i32, i32
  }
  func.func @transform_2(%arg0: i32) -> (i32, i32) {
    %c0_i32 = arith.constant 0 : i32
    %c0_i32_0 = arith.constant 0 : i32
    %c0_i32_1 = arith.constant 0 : i32
    return %c0_i32, %c0_i32_0 : i32, i32
  }
  func.func @transform_3(%arg0: i32) -> (i32, i32) {
    %c0_i32 = arith.constant 0 : i32
    %c0_i32_0 = arith.constant 0 : i32
    %c0_i32_1 = arith.constant 0 : i32
    return %c0_i32, %c0_i32_0 : i32, i32
  }
  func.func @transform_4(%arg0: i32) -> (i32, i32) {
    %c0_i32 = arith.constant 0 : i32
    %c0_i32_0 = arith.constant 0 : i32
    %c0_i32_1 = arith.constant 0 : i32
    return %c0_i32, %c0_i32_0 : i32, i32
  }
  func.func @transform_5(%arg0: i32) -> (i32, i32) {
    %c0_i32 = arith.constant 0 : i32
    %c0_i32_0 = arith.constant 0 : i32
    %c0_i32_1 = arith.constant 0 : i32
    return %c0_i32, %c0_i32_0 : i32, i32
  }
  func.func @transform_6(%arg0: i32) -> (i32, i32) {
    %c0_i32 = arith.constant 0 : i32
    %c0_i32_0 = arith.constant 0 : i32
    %c0_i32_1 = arith.constant 0 : i32
    return %c0_i32, %c0_i32_0 : i32, i32
  }
  func.func @transform_7(%arg0: i32) -> (i32, i32) {
    %c0_i32 = arith.constant 0 : i32
    %c0_i32_0 = arith.constant 0 : i32
    return %arg0, %c0_i32 : i32, i32
  }
}

</mosaic_0001>

<bundles_post_ra>
// kernel: tpu_custom_call.1
= control target key start
LH: loop header
LB: loop body
LE: loop exit
PB: predicated region body
PF: predicated region fallthrough
CT: control target
= control target key end

     0   :  { %12 = vsyncpa [#allocation3], 0  ;;  %s2075_s0 = inlined_call_operand.hbm [shape: bf16[16,784], index: 0, kind: input, shape index: {}]   ;;  %s2076_s1 = inlined_call_operand.hbm [shape: bf16[784,256], index: 1, kind: input, shape index: {}]   ;;  %s2077_s2 = inlined_call_operand.vmem [shape: f32[1,256], index: 2, kind: input, shape index: {}]   ;;  %s2078_s3 = inlined_call_operand.hbm [shape: bf16[256,256], index: 3, kind: input, shape index: {}]   ;;  %s2079_s4 = inlined_call_operand.vmem [shape: f32[1,256], index: 4, kind: input, shape index: {}]   ;;  %s2080_s5 = inlined_call_operand.hbm [shape: bf16[256,128], index: 5, kind: input, shape index: {}]   ;;  %s2081_s6 = inlined_call_operand.vmem [shape: f32[1,128], index: 6, kind: input, shape index: {}]   ;;  %s2082_s7 = inlined_call_operand.hbm [shape: bf16[16,128], index: 7, kind: output, shape index: {}]  }
   0x1   :  { %13 = vsyncpa [#allocation6], 0 }
   0x2   :  { %14 = vsyncpa [#allocation9], 0 }
   0x3   :  { %15 = vsyncpa [#allocation4], 0  ;;  %s1931_s24 = smov [#allocation5]   ;;  %s1813_s28 = scalar_lea.hbm %s2076_s1, 12544 }
   0x4   :  { %s33_s25 = sshll.u32 %s1931_s24, 4  ;;  %p1814_p0 = scmp.ne.s32.totalorder %s2076_s1, %s1813_s28  ;;  %s34_s25 = int_to_ptr.vmem [resolvable:$true] %s33_s25 }
   0x5   :  { %p1817_p1 = scmp.lt.u32.totalorder %s1813_s28, %s2076_s1 }
   0x7   :  { %p1819_p2 = pnand %p1817_p1, %p1814_p0 }
   0x9   :  { %1822 = shalt.err (!%p1819_p2)
}
   0xa   :  { %s1823_s10 = scalar_lea.vmem %s34_s25, 12544  ;;  %p1828_p4 = scmp.lt.s32.totalorder %s34_s25, %s34_s25 }
   0xb   :  { %p1824_p3 = scmp.ne.s32.totalorder %s34_s25, %s1823_s10  ;;  %p1829_p5 = scmp.lt.s32.totalorder %s1823_s10, %s1823_s10 }
   0xd   :  { %p1830_p6 = por %p1829_p5, %p1828_p4 }
   0xf   :  { %p1831_p7 = pnand %p1830_p6, %p1824_p3 }
  0x11   :  { %1834 = shalt.err (!%p1831_p7)
}
  0x12   :  { %s1932_s11 = smov 128   ;;  %s1933_s12 = smov 8  }
  0x13   :  { %39 = dma.hbm_to_vmem [thread:$0]  %s2076_s1, 12544, %s34_s25, [#allocation6], %s1932_s11, %s1932_s11, %s1933_s12  }
  0x14   :  { %s1934_s15 = smov [#allocation2]   ;;  %s1835_s19 = scalar_lea.hbm %s2075_s0, 896 }
  0x15   :  { %s21_s16 = sshll.u32 %s1934_s15, 4  ;;  %p1836_p8 = scmp.ne.s32.totalorder %s2075_s0, %s1835_s19  ;;  %s22_s16 = int_to_ptr.vmem [resolvable:$true] %s21_s16 }
  0x16   :  { %p1839_p9 = scmp.lt.u32.totalorder %s1835_s19, %s2075_s0 }
  0x18   :  { %p1841_p10 = pnand %p1839_p9, %p1836_p8 }
  0x1a   :  { %1844 = shalt.err (!%p1841_p10)
}
  0x1b   :  { %s1845_s24 = scalar_lea.vmem %s22_s16, 896  ;;  %p1850_p12 = scmp.lt.s32.totalorder %s22_s16, %s22_s16 }
  0x1c   :  { %p1846_p11 = scmp.ne.s32.totalorder %s22_s16, %s1845_s24  ;;  %p1851_p13 = scmp.lt.s32.totalorder %s1845_s24, %s1845_s24 }
  0x1e   :  { %p1852_p0 = por %p1851_p13, %p1850_p12 }
  0x20   :  { %p1853_p1 = pnand %p1852_p0, %p1846_p11 }
  0x22   :  { %1856 = shalt.err (!%p1853_p1)
}
  0x23   :  { %s1935_s1 = smov 448   ;;  %s1936_s25 = smov 28  }
  0x24   :  { %27 = dma.hbm_to_vmem [thread:$0]  %s2075_s0, 896, %s22_s16, [#allocation3], %s1935_s1, %s1935_s1, %s1936_s25  }
  0x25   :  { %s1937_s28 = smov [#allocation7]   ;;  %s1938_s30 = smov [#allocation8]  }
  0x26   :  { %s47_s29 = sshll.u32 %s1937_s28, 4  ;;  %s61_s8 = sshll.u32 %s1938_s30, 4  ;;  %s48_s29 = int_to_ptr.vmem [resolvable:$true] %s47_s29  ;;  %s2010_s8 = int_to_ptr.vmem [resolvable:$true] %s61_s8 }
  0x27   :  { %s1857_s13 = scalar_lea.hbm %s2078_s3, 4096 }
  0x28   :  { %p1858_p2 = scmp.ne.s32.totalorder %s2078_s3, %s1857_s13  ;;  %p1861_p3 = scmp.lt.u32.totalorder %s1857_s13, %s2078_s3 }
  0x2a   :  { %p1863_p4 = pnand %p1861_p3, %p1858_p2 }
  0x2c   :  { %1866 = shalt.err (!%p1863_p4)
}
  0x2d   :  { %s1867_s0 = scalar_lea.vmem %s48_s29, 4096  ;;  %p1872_p6 = scmp.lt.s32.totalorder %s48_s29, %s48_s29 }
  0x2e   :  { %p1868_p5 = scmp.ne.s32.totalorder %s48_s29, %s1867_s0  ;;  %p1873_p7 = scmp.lt.s32.totalorder %s1867_s0, %s1867_s0 }
  0x30   :  { %p1874_p8 = por %p1873_p7, %p1872_p6 }
  0x32   :  { %p1875_p9 = pnand %p1874_p8, %p1868_p5 }
  0x34   :  { %1878 = shalt.err (!%p1875_p9)
}
  0x35   :  { %53 = dma.hbm_to_vmem [thread:$0]  %s2078_s3, 4096, %s48_s29, [#allocation6], %s1932_s11, %s1932_s11, %s1933_s12  }
  0x36   :  { %s1879_s22 = scalar_lea.hbm %s2080_s5, 2048 }
  0x37   :  { %p1880_p10 = scmp.ne.s32.totalorder %s2080_s5, %s1879_s22  ;;  %p1883_p11 = scmp.lt.u32.totalorder %s1879_s22, %s2080_s5 }
  0x39   :  { %p1885_p12 = pnand %p1883_p11, %p1880_p10 }
  0x3b   :  { %1888 = shalt.err (!%p1885_p12)
}
  0x3c   :  { %s1889_s26 = scalar_lea.vmem %s2010_s8, 2048  ;;  %p1894_p0 = scmp.lt.s32.totalorder %s2010_s8, %s2010_s8 }
  0x3d   :  { %p1890_p13 = scmp.ne.s32.totalorder %s2010_s8, %s1889_s26  ;;  %p1895_p1 = scmp.lt.s32.totalorder %s1889_s26, %s1889_s26 }
  0x3f   :  { %p1896_p2 = por %p1895_p1, %p1894_p0 }
  0x41   :  { %p1897_p3 = pnand %p1896_p2, %p1890_p13 }
  0x43   :  { %1900 = shalt.err (!%p1897_p3)
}
  0x44   :  { %s1939_s3 = smov 64   ;;  %s1940_s11 = smov 4  }
  0x45   :  { %67 = dma.hbm_to_vmem [thread:$0]  %s2080_s5, 2048, %s2010_s8, [#allocation9], %s1939_s3, %s1939_s3, %s1940_s11  }
  0x46   :  { %1923 = dma.done.wait [#allocation3], 896  }
  0x47   :  { %1924 = vsyncadd [#allocation3], 4294966400 }
  0x48   :  { %1925 = dma.done.wait [#allocation6], 16640  }
  0x49   :  { %1926 = vsyncadd [#allocation6], 4294950656 }
  0x4a   :  { %1927 = dma.done.wait [#allocation9], 2048  }
  0x4b   :  { %1928 = vsyncadd [#allocation9], 4294965248  ;;  %v1592_v0 = vld [vmem:[#allocation5 + $0x104] ss:$8 sps:$4 sm:$0xff]   ;;  %v1594_v1 = vld [vmem:[#allocation5 + $0x100] ss:$8 sps:$4 sm:$0xff]  }
  0x4c   :  { %773 = vmatprep.subr.bf16.mxu0 %v1592_v0  ;;  %v1595_v2 = vld [vmem:[#allocation5 + $0x114] ss:$8 sps:$4 sm:$0xff]   ;;  %v1597_v3 = vld [vmem:[#allocation5 + $0x110] ss:$8 sps:$4 sm:$0xff]   ;;  %v1598_v4 = vld [vmem:[#allocation5 + $0x124] ss:$8 sps:$4 sm:$0xff]  }
  0x4d   :  { %774 = vmatpush1.bf16.msra.mxu0 %v1594_v1  ;;  %v1600_v5 = vld [vmem:[#allocation5 + $0x120] ss:$8 sps:$4 sm:$0xff]   ;;  %v1601_v6 = vld [vmem:[#allocation5 + $0x134] ss:$8 sps:$4 sm:$0xff]   ;;  %v1603_v7 = vld [vmem:[#allocation5 + $0x130] ss:$8 sps:$4 sm:$0xff]  }
  0x4e   :  { %775 = vmatprep.subr.bf16.mxu0 %v1595_v2  ;;  %v1604_v8 = vld [vmem:[#allocation5 + $0x144] ss:$8 sps:$4 sm:$0xff]   ;;  %v1606_v9 = vld [vmem:[#allocation5 + $0x140] ss:$8 sps:$4 sm:$0xff]   ;;  %v1607_v10 = vld [vmem:[#allocation5 + $0x154] ss:$8 sps:$4 sm:$0xff]  }
  0x4f   :  { %v1609_v11 = vld [vmem:[#allocation5 + $0x150] ss:$8 sps:$4 sm:$0xff]   ;;  %v1610_v12 = vld [vmem:[#allocation5 + $0x164] ss:$8 sps:$4 sm:$0xff]   ;;  %v1612_v14 = vld [vmem:[#allocation5 + $0x160] ss:$8 sps:$4 sm:$0xff]  }
  0x50   :  { %v1642_v13 = vld [vmem:[#allocation2 + $0xc] ss:$28 sps:$4 sm:$0xff]   ;;  %v1649_v16 = vld [vmem:[#allocation5 + $0x4] ss:$8 sps:$4 sm:$0xff]   ;;  %v1654_v19 = vld [vmem:[#allocation5] ss:$8 sps:$4 sm:$0xff]  }
  0x51   :  { %776 = vmatpush1.bf16.msra.mxu0 %v1597_v3  ;;  %v1613_v15 = vld [vmem:[#allocation5 + $0x174] ss:$8 sps:$4 sm:$0xff]   ;;  %805 = vmatprep.mubr.bf16.mxu0 %v1642_v13  ;;  %v1615_v17 = vld [vmem:[#allocation5 + $0x170] ss:$8 sps:$4 sm:$0xff]   ;;  %v1616_v18 = vld [vmem:[#allocation5 + $0x184] ss:$8 sps:$4 sm:$0xff]  }
  0x52   :  { %777 = vmatprep.subr.bf16.mxu0 %v1598_v4  ;;  %730 = vmatprep.subr.bf16.mxu1 %v1649_v16  ;;  %v1655_v20 = vld [vmem:[#allocation5 + $0x14] ss:$8 sps:$4 sm:$0xff]   ;;  %v1618_v21 = vld [vmem:[#allocation5 + $0x180] ss:$8 sps:$4 sm:$0xff]   ;;  %v1660_v22 = vld [vmem:[#allocation5 + $0x10] ss:$8 sps:$4 sm:$0xff]  }
  0x53   :  { %731 = vmatpush1.bf16.msra.mxu1 %v1654_v19  ;;  %v1661_v23 = vld [vmem:[#allocation5 + $0x24] ss:$8 sps:$4 sm:$0xff]   ;;  %v1619_v24 = vld [vmem:[#allocation5 + $0x194] ss:$8 sps:$4 sm:$0xff]   ;;  %v1666_v25 = vld [vmem:[#allocation5 + $0x20] ss:$8 sps:$4 sm:$0xff]  }
  0x54   :  { %732 = vmatprep.subr.bf16.mxu1 %v1655_v20  ;;  %v1667_v26 = vld [vmem:[#allocation5 + $0x34] ss:$8 sps:$4 sm:$0xff]   ;;  %v1621_v27 = vld [vmem:[#allocation5 + $0x190] ss:$8 sps:$4 sm:$0xff]   ;;  %v1622_v28 = vld [vmem:[#allocation5 + $0x1a4] ss:$8 sps:$4 sm:$0xff]  }
  0x55   :  { %778 = vmatpush1.bf16.msra.mxu0 %v1600_v5  ;;  %v1672_v29 = vld [vmem:[#allocation5 + $0x30] ss:$8 sps:$4 sm:$0xff]   ;;  %v1673_v30 = vld [vmem:[#allocation5 + $0x44] ss:$8 sps:$4 sm:$0xff]   ;;  %v1624_v31 = vld [vmem:[#allocation5 + $0x1a0] ss:$8 sps:$4 sm:$0xff]  }
  0x56   :  { %779 = vmatprep.subr.bf16.mxu0 %v1601_v6  ;;  %v1625_v32 = vld [vmem:[#allocation5 + $0x1b4] ss:$8 sps:$4 sm:$0xff]   ;;  %v1678_v33 = vld [vmem:[#allocation5 + $0x40] ss:$8 sps:$4 sm:$0xff]   ;;  %v1627_v35 = vld [vmem:[#allocation5 + $0x1b0] ss:$8 sps:$4 sm:$0xff]  }
  0x57   :  { %733 = vmatpush1.bf16.msra.mxu1 %v1660_v22  ;;  %v1679_v34 = vld [vmem:[#allocation5 + $0x54] ss:$8 sps:$4 sm:$0xff]   ;;  %v1628_v36 = vld [vmem:[#allocation5 + $0x1c4] ss:$8 sps:$4 sm:$0xff]   ;;  %v1684_v37 = vld [vmem:[#allocation5 + $0x50] ss:$8 sps:$4 sm:$0xff]  }
  0x58   :  { %734 = vmatprep.subr.bf16.mxu1 %v1661_v23  ;;  %v1685_v38 = vld [vmem:[#allocation5 + $0x64] ss:$8 sps:$4 sm:$0xff]   ;;  %v1630_v39 = vld [vmem:[#allocation5 + $0x1c0] ss:$8 sps:$4 sm:$0xff]   ;;  %v1631_v40 = vld [vmem:[#allocation5 + $0x1d4] ss:$8 sps:$4 sm:$0xff]  }
  0x59   :  { %780 = vmatpush1.bf16.msra.mxu0 %v1603_v7  ;;  %v1690_v41 = vld [vmem:[#allocation5 + $0x60] ss:$8 sps:$4 sm:$0xff]   ;;  %v1691_v42 = vld [vmem:[#allocation5 + $0x74] ss:$8 sps:$4 sm:$0xff]   ;;  %v1633_v43 = vld [vmem:[#allocation5 + $0x1d0] ss:$8 sps:$4 sm:$0xff]  }
  0x5a   :  { %781 = vmatprep.subr.bf16.mxu0 %v1604_v8  ;;  %v1634_v44 = vld [vmem:[#allocation5 + $0x1e4] ss:$8 sps:$4 sm:$0xff]   ;;  %v1696_v45 = vld [vmem:[#allocation5 + $0x70] ss:$8 sps:$4 sm:$0xff]   ;;  %v1636_v47 = vld [vmem:[#allocation5 + $0x1e0] ss:$8 sps:$4 sm:$0xff]  }
  0x5b   :  { %735 = vmatpush1.bf16.msra.mxu1 %v1666_v25  ;;  %v1697_v46 = vld [vmem:[#allocation5 + $0x84] ss:$8 sps:$4 sm:$0xff]   ;;  %v1637_v48 = vld [vmem:[#allocation5 + $0x1f4] ss:$8 sps:$4 sm:$0xff]   ;;  %v1702_v49 = vld [vmem:[#allocation5 + $0x80] ss:$8 sps:$4 sm:$0xff]  }
  0x5c   :  { %736 = vmatprep.subr.bf16.mxu1 %v1667_v26  ;;  %v1703_v50 = vld [vmem:[#allocation5 + $0x94] ss:$8 sps:$4 sm:$0xff]   ;;  %v1639_v51 = vld [vmem:[#allocation5 + $0x1f0] ss:$8 sps:$4 sm:$0xff]   ;;  %v1645_v52 = vld [vmem:[#allocation5 + $0x204] ss:$8 sps:$4 sm:$0xff]  }
  0x5d   :  { %782 = vmatpush1.bf16.msra.mxu0 %v1606_v9  ;;  %v1708_v53 = vld [vmem:[#allocation5 + $0x90] ss:$8 sps:$4 sm:$0xff]   ;;  %v1709_v55 = vld [vmem:[#allocation5 + $0xa4] ss:$8 sps:$4 sm:$0xff]   ;;  %v1643_v56 = vld [vmem:[#allocation5 + $0x200] ss:$8 sps:$4 sm:$0xff]  }
  0x5e   :  { %783 = vmatprep.subr.bf16.mxu0 %v1607_v10  ;;  %v1640_v54 = vld [vmem:[#allocation2 + $0x8] ss:$28 sps:$4 sm:$0xff]   ;;  %v1735_v57 = vld [vmem:[#allocation2 + $0x14] ss:$28 sps:$4 sm:$0xff]   ;;  %v1714_v59 = vld [vmem:[#allocation5 + $0xa0] ss:$8 sps:$4 sm:$0xff]  }
  0x5f   :  { %737 = vmatpush1.bf16.msra.mxu1 %v1672_v29  ;;  %v1648_v58 = vld [vmem:[#allocation5 + $0x214] ss:$8 sps:$4 sm:$0xff]   ;;  %v1646_v61 = vld [vmem:[#allocation5 + $0x210] ss:$8 sps:$4 sm:$0xff]   ;;  %v1653_v62 = vld [vmem:[#allocation5 + $0x224] ss:$8 sps:$4 sm:$0xff]  }
  0x60   :  { %738 = vmatprep.subr.bf16.mxu1 %v1673_v30  ;;  %v1715_v60 = vld [vmem:[#allocation5 + $0xb4] ss:$8 sps:$4 sm:$0xff]   ;;  %v1720_v63 = vld [vmem:[#allocation5 + $0xb0] ss:$8 sps:$4 sm:$0xff]   ;;  %v1747_v0 = vld [vmem:[#allocation2 + $0x4] ss:$28 sps:$4 sm:$0xff]  }
  0x61   :  { %784 = vmatpush1.bf16.msra.mxu0 %v1609_v11  ;;  %v1721_v1 = vld [vmem:[#allocation5 + $0xc4] ss:$8 sps:$4 sm:$0xff]   ;;  %v1651_v2 = vld [vmem:[#allocation5 + $0x220] ss:$8 sps:$4 sm:$0xff]   ;;  %762 = vmatprep.mubr.bf16.mxu1 %v1747_v0  ;;  %v1659_v3 = vld [vmem:[#allocation5 + $0x234] ss:$8 sps:$4 sm:$0xff]  }
  0x62   :  { %785 = vmatprep.subr.bf16.mxu0 %v1610_v12  ;;  %v1726_v4 = vld [vmem:[#allocation5 + $0xc0] ss:$8 sps:$4 sm:$0xff]   ;;  %v1727_v5 = vld [vmem:[#allocation5 + $0xd4] ss:$8 sps:$4 sm:$0xff]   ;;  %v1657_v6 = vld [vmem:[#allocation5 + $0x230] ss:$8 sps:$4 sm:$0xff]  }
  0x63   :  { %739 = vmatpush1.bf16.msra.mxu1 %v1678_v33  ;;  %v1665_v7 = vld [vmem:[#allocation5 + $0x244] ss:$8 sps:$4 sm:$0xff]   ;;  %v1732_v8 = vld [vmem:[#allocation5 + $0xd0] ss:$8 sps:$4 sm:$0xff]   ;;  %v1663_v10 = vld [vmem:[#allocation5 + $0x240] ss:$8 sps:$4 sm:$0xff]  }
  0x64   :  { %740 = vmatprep.subr.bf16.mxu1 %v1679_v34  ;;  %v1736_v9 = vld [vmem:[#allocation5 + $0xe4] ss:$8 sps:$4 sm:$0xff]   ;;  %v1671_v11 = vld [vmem:[#allocation5 + $0x254] ss:$8 sps:$4 sm:$0xff]   ;;  %v1741_v12 = vld [vmem:[#allocation5 + $0xe0] ss:$8 sps:$4 sm:$0xff]  }
  0x65   :  { %786 = vmatpush1.bf16.msra.mxu0 %v1612_v14  ;;  %v1742_v13 = vld [vmem:[#allocation5 + $0xf4] ss:$8 sps:$4 sm:$0xff]   ;;  %v1669_v14 = vld [vmem:[#allocation5 + $0x250] ss:$8 sps:$4 sm:$0xff]   ;;  %v1675_v16 = vld [vmem:[#allocation5 + $0x260] ss:$8 sps:$4 sm:$0xff]  }
  0x66   :  { %787 = vmatprep.subr.bf16.mxu0 %v1613_v15  ;;  %v1677_v15 = vld [vmem:[#allocation5 + $0x264] ss:$8 sps:$4 sm:$0xff]   ;;  %v1751_v20 = vld [vmem:[#allocation7 + $0x4] ss:$8 sps:$4 sm:$0xff]   ;;  %v1681_v23 = vld [vmem:[#allocation5 + $0x270] ss:$8 sps:$4 sm:$0xff]  }
  0x67   :  { %741 = vmatpush1.bf16.msra.mxu1 %v1684_v37  ;;  %v1745_v19 = vld [vmem:[#allocation2] ss:$28 sps:$4 sm:$0xff]   ;;  %v1757_v26 = vld [vmem:[#allocation7 + $0x24] ss:$8 sps:$4 sm:$0xff]   ;;  %v1755_v29 = vld [vmem:[#allocation7 + $0x20] ss:$8 sps:$4 sm:$0xff]  }
  0x68   :  { %742 = vmatprep.subr.bf16.mxu1 %v1685_v38  ;;  %v1754_v22 = vld [vmem:[#allocation7 + $0x14] ss:$8 sps:$4 sm:$0xff]   ;;  %v1752_v25 = vld [vmem:[#allocation7 + $0x10] ss:$8 sps:$4 sm:$0xff]   ;;  %v1763_v34 = vld [vmem:[#allocation7 + $0x44] ss:$8 sps:$4 sm:$0xff]  }
  0x69   :  { %788 = vmatpush1.bf16.msra.mxu0 %v1615_v17  ;;  %v1744_v17 = vld [vmem:[#allocation5 + $0xf0] ss:$8 sps:$4 sm:$0xff]   ;;  %v1760_v30 = vld [vmem:[#allocation7 + $0x34] ss:$8 sps:$4 sm:$0xff]   ;;  %v1758_v33 = vld [vmem:[#allocation7 + $0x30] ss:$8 sps:$4 sm:$0xff]  }
  0x6a   :  { %789 = vmatprep.subr.bf16.mxu0 %v1616_v18  ;;  %v1683_v18 = vld [vmem:[#allocation5 + $0x274] ss:$8 sps:$4 sm:$0xff]   ;;  %v1761_v37 = vld [vmem:[#allocation7 + $0x40] ss:$8 sps:$4 sm:$0xff]   ;;  %v1766_v38 = vld [vmem:[#allocation7 + $0x54] ss:$8 sps:$4 sm:$0xff]  }
  0x6b   :  { %743 = vmatpush1.bf16.msra.mxu1 %v1690_v41  ;;  %v1764_v41 = vld [vmem:[#allocation7 + $0x50] ss:$8 sps:$4 sm:$0xff]   ;;  %vm726_vm0 = vcmask 130048   ;;  %s1942_s8 = smov [#allocation10]  }
  0x6c   :  { %744 = vmatprep.subr.bf16.mxu1 %v1691_v42  ;;  %v1769_v42 = vld [vmem:[#allocation7 + $0x64] ss:$8 sps:$4 sm:$0xff]   ;;  %v1782_v0 = vld [vmem:[#allocation7 + $0xb0] ss:$8 sps:$4 sm:$0xff]   ;;  %s1364_s9 = sshll.u32 %s1942_s8, 4  ;;  %s1365_s9 = int_to_ptr.vmem [resolvable:$true] %s1364_s9 }
  0x6d   :  { %790 = vmatpush1.bf16.msra.mxu0 %v1618_v21  ;;  %v1749_v21 = vld [vmem:[#allocation7] ss:$8 sps:$4 sm:$0xff]   ;;  %s1901_s10 = scalar_lea.vmem %s1365_s9, 128  ;;  %p1906_p5 = scmp.lt.s32.totalorder %s1365_s9, %s1365_s9 }
  0x6e   :  { %791 = vmatprep.subr.bf16.mxu0 %v1619_v24  ;;  %v1689_v24 = vld [vmem:[#allocation5 + $0x284] ss:$8 sps:$4 sm:$0xff]   ;;  %p1902_p4 = scmp.ne.s32.totalorder %s1365_s9, %s1901_s10  ;;  %p1907_p6 = scmp.lt.s32.totalorder %s1901_s10, %s1901_s10 }
  0x6f   :  { %745 = vmatpush1.bf16.msra.mxu1 %v1696_v45  ;;  %v1767_v45 = vld [vmem:[#allocation7 + $0x60] ss:$8 sps:$4 sm:$0xff]  }
  0x70   :  { %746 = vmatprep.subr.bf16.mxu1 %v1697_v46  ;;  %v1772_v46 = vld [vmem:[#allocation7 + $0x74] ss:$8 sps:$4 sm:$0xff]   ;;  %p1908_p7 = por %p1907_p6, %p1906_p5 }
  0x71   :  { %792 = vmatpush1.bf16.msra.mxu0 %v1621_v27  ;;  %v1687_v27 = vld [vmem:[#allocation5 + $0x280] ss:$8 sps:$4 sm:$0xff]  }
  0x72   :  { %793 = vmatprep.subr.bf16.mxu0 %v1622_v28  ;;  %v1695_v28 = vld [vmem:[#allocation5 + $0x294] ss:$8 sps:$4 sm:$0xff]   ;;  %p1909_p8 = pnand %p1908_p7, %p1902_p4 }
  0x73   :  { %747 = vmatpush1.bf16.msra.mxu1 %v1702_v49  ;;  %v1770_v49 = vld [vmem:[#allocation7 + $0x70] ss:$8 sps:$4 sm:$0xff]  }
  0x74   :  { %748 = vmatprep.subr.bf16.mxu1 %v1703_v50  ;;  %v1775_v50 = vld [vmem:[#allocation7 + $0x84] ss:$8 sps:$4 sm:$0xff]  }
  0x75   :  { %794 = vmatpush1.bf16.msra.mxu0 %v1624_v31  ;;  %v1693_v31 = vld [vmem:[#allocation5 + $0x290] ss:$8 sps:$4 sm:$0xff]  }
  0x76   :  { %795 = vmatprep.subr.bf16.mxu0 %v1625_v32  ;;  %v1701_v32 = vld [vmem:[#allocation5 + $0x2a4] ss:$8 sps:$4 sm:$0xff]  }
  0x77   :  { %749 = vmatpush1.bf16.msra.mxu1 %v1708_v53  ;;  %v1773_v53 = vld [vmem:[#allocation7 + $0x80] ss:$8 sps:$4 sm:$0xff]  }
  0x78   :  { %750 = vmatprep.subr.bf16.mxu1 %v1709_v55  ;;  %v1729_v55 = vld [vmem:[#allocation5 + $0x2f0] ss:$8 sps:$4 sm:$0xff]  }
  0x79   :  { %796 = vmatpush1.bf16.msra.mxu0 %v1627_v35  ;;  %v1699_v35 = vld [vmem:[#allocation5 + $0x2a0] ss:$8 sps:$4 sm:$0xff]  }
  0x7a   :  { %797 = vmatprep.subr.bf16.mxu0 %v1628_v36  ;;  %v1707_v36 = vld [vmem:[#allocation5 + $0x2b4] ss:$8 sps:$4 sm:$0xff]  }
  0x7b   :  { %751 = vmatpush1.bf16.msra.mxu1 %v1714_v59  ;;  %v1781_v59 = vld [vmem:[#allocation7 + $0xa4] ss:$8 sps:$4 sm:$0xff]  }
  0x7c   :  { %752 = vmatprep.subr.bf16.mxu1 %v1715_v60  ;;  %v1738_v60 = vld [vmem:[#allocation5 + $0x300] ss:$8 sps:$4 sm:$0xff]  }
  0x7d   :  { %798 = vmatpush1.bf16.msra.mxu0 %v1630_v39  ;;  %v1705_v39 = vld [vmem:[#allocation5 + $0x2b0] ss:$8 sps:$4 sm:$0xff]  }
  0x7e   :  { %799 = vmatprep.subr.bf16.mxu0 %v1631_v40  ;;  %v1713_v40 = vld [vmem:[#allocation5 + $0x2c4] ss:$8 sps:$4 sm:$0xff]  }
  0x7f   :  { %753 = vmatpush1.bf16.msra.mxu1 %v1720_v63  ;;  %v1941_v63 = vmov 0  }
  0x80   :  { %754 = vmatprep.subr.bf16.mxu1 %v1721_v1  ;;  %v1748_v1 = vld [vmem:[#allocation2 + $0x18] ss:$28 sps:$4 sm:$0xff]  }
  0x81   :  { %800 = vmatpush1.bf16.msra.mxu0 %v1633_v43  ;;  %v1711_v43 = vld [vmem:[#allocation5 + $0x2c0] ss:$8 sps:$4 sm:$0xff]  }
  0x82   :  { %801 = vmatprep.subr.bf16.mxu0 %v1634_v44  ;;  %v1719_v44 = vld [vmem:[#allocation5 + $0x2d4] ss:$8 sps:$4 sm:$0xff]  }
  0x83   :  { %755 = vmatpush1.bf16.msra.mxu1 %v1726_v4  ;;  %v1790_v4 = vld [vmem:[#allocation7 + $0xd4] ss:$8 sps:$4 sm:$0xff]  }
  0x84   :  { %756 = vmatprep.subr.bf16.mxu1 %v1727_v5  ;;  %v1788_v5 = vld [vmem:[#allocation7 + $0xd0] ss:$8 sps:$4 sm:$0xff]  }
  0x85   :  { %802 = vmatpush1.bf16.msra.mxu0 %v1636_v47  ;;  %v1717_v47 = vld [vmem:[#allocation5 + $0x2d0] ss:$8 sps:$4 sm:$0xff]  }
  0x86   :  { %803 = vmatprep.subr.bf16.mxu0 %v1637_v48  ;;  %v1725_v48 = vld [vmem:[#allocation5 + $0x2e4] ss:$8 sps:$4 sm:$0xff]  }
  0x87   :  { %757 = vmatpush1.bf16.msra.mxu1 %v1732_v8  ;;  %v1796_v8 = vld [vmem:[#allocation7 + $0xf4] ss:$8 sps:$4 sm:$0xff]  }
  0x88   :  { %758 = vmatprep.subr.bf16.mxu1 %v1736_v9  ;;  %v1794_v9 = vld [vmem:[#allocation7 + $0xf0] ss:$8 sps:$4 sm:$0xff]  }
  0x89   :  { %804 = vmatpush1.bf16.msra.mxu0 %v1639_v51  ;;  %v1723_v51 = vld [vmem:[#allocation5 + $0x2e0] ss:$8 sps:$4 sm:$0xff]  }
  0x8a   :  { %816 = vmatprep.subr.bf16.mxu0 %v1645_v52  ;;  %v1731_v52 = vld [vmem:[#allocation5 + $0x2f4] ss:$8 sps:$4 sm:$0xff]  }
  0x8b   :  { %759 = vmatpush1.bf16.msra.mxu1 %v1741_v12 }
  0x8c   :  { %806 = vmatmul.mubr.bf16.vlgmr.msra.gmra.mrb[0].mxu0 %v1640_v54  ;;  %760 = vmatprep.subr.bf16.mxu1 %v1742_v13  ;;  %v1778_v54 = vld [vmem:[#allocation7 + $0x94] ss:$8 sps:$4 sm:$0xff]  }
  0x8d   :  { %817 = vmatpush1.bf16.msra.mxu0 %v1643_v56  ;;  %848 = vmatprep.mubr.bf16.mxu0 %v1735_v57  ;;  %v1740_v56 = vld [vmem:[#allocation5 + $0x304] ss:$8 sps:$4 sm:$0xff]   ;;  %v1776_v57 = vld [vmem:[#allocation7 + $0x90] ss:$8 sps:$4 sm:$0xff]  }
  0x8e   :  { %818 = vmatprep.subr.bf16.mxu0 %v1648_v58  ;;  %v1733_v58 = vld [vmem:[#allocation2 + $0x10] ss:$28 sps:$4 sm:$0xff]  }
  0x8f   :  { %761 = vmatpush1.bf16.msra.mxu1 %v1744_v17 }
  0x90   :  { %1116 = vmatprep.subr.bf16.mxu1 %v1751_v20 }
  0x91   :  { %819 = vmatpush1.bf16.msra.mxu0 %v1646_v61  ;;  %v1779_v61 = vld [vmem:[#allocation7 + $0xa0] ss:$8 sps:$4 sm:$0xff]  }
  0x92   :  { %820 = vmatprep.subr.bf16.mxu0 %v1653_v62  ;;  %763 = vmatmul.mubr.bf16.vlgmr.msra.gmra.mrb[0].mxu1 %v1745_v19  ;;  %v1784_v62 = vld [vmem:[#allocation7 + $0xb4] ss:$8 sps:$4 sm:$0xff]  }
  0x93   :  { %1117 = vmatpush1.bf16.msra.mxu1 %v1749_v21 }
  0x94   :  { %1118 = vmatprep.subr.bf16.mxu1 %v1754_v22 }
  0x95   :  { %821 = vmatpush1.bf16.msra.mxu0 %v1651_v2  ;;  %v1785_v2 = vld [vmem:[#allocation7 + $0xc0] ss:$8 sps:$4 sm:$0xff]  }
  0x96   :  { %822 = vmatprep.subr.bf16.mxu0 %v1659_v3  ;;  %v1787_v3 = vld [vmem:[#allocation7 + $0xc4] ss:$8 sps:$4 sm:$0xff]  }
  0x97   :  { %1119 = vmatpush1.bf16.msra.mxu1 %v1752_v25 }
  0x98   :  { %1120 = vmatprep.subr.bf16.mxu1 %v1757_v26 }
  0x99   :  { %823 = vmatpush1.bf16.msra.mxu0 %v1657_v6  ;;  %v1793_v6 = vld [vmem:[#allocation7 + $0xe4] ss:$8 sps:$4 sm:$0xff]  }
  0x9a   :  { %824 = vmatprep.subr.bf16.mxu0 %v1665_v7  ;;  %v1791_v7 = vld [vmem:[#allocation7 + $0xe0] ss:$8 sps:$4 sm:$0xff]  }
  0x9b   :  { %1121 = vmatpush1.bf16.msra.mxu1 %v1755_v29 }
  0x9c   :  { %1122 = vmatprep.subr.bf16.mxu1 %v1760_v30 }
  0x9d   :  { %825 = vmatpush1.bf16.msra.mxu0 %v1663_v10  ;;  %v1797_v10 = vld [vmem:[#allocation8 + $0x40] sm:$0xff]  }
  0x9e   :  { %826 = vmatprep.subr.bf16.mxu0 %v1671_v11 }
  0x9f   :  { %1123 = vmatpush1.bf16.msra.mxu1 %v1758_v33 }
  0xa0   :  { %1124 = vmatprep.subr.bf16.mxu1 %v1763_v34 }
  0xa1   :  { %827 = vmatpush1.bf16.msra.mxu0 %v1669_v14 }
  0xa2   :  { %828 = vmatprep.subr.bf16.mxu0 %v1677_v15  ;;  %v191_v15 = vlaneseq }
  0xa3   :  { %1125 = vmatpush1.bf16.msra.mxu1 %v1761_v37 }
  0xa4   :  { %1126 = vmatprep.subr.bf16.mxu1 %v1766_v38 }
  0xa5   :  { %829 = vmatpush1.bf16.msra.mxu0 %v1675_v16  ;;  %v2047_v16 = vshrl.u32 %v191_v15, 7 }
  0xa6   :  { %830 = vmatprep.subr.bf16.mxu0 %v1683_v18  ;;  %v189_v18 = vld [vmem:[%s2077_s2] sm:$0x3] }
  0xa7   :  { %1127 = vmatpush1.bf16.msra.mxu1 %v1764_v41  ;;  %v193_v17 = vsub.s32 0, %v2047_v16  ;;  %v197_v19 = vsub.s32 1, %v2047_v16 }
  0xa8   :  { %1128 = vmatprep.subr.bf16.mxu1 %v1769_v42 }
  0xa9   :  { %831 = vmatpush1.bf16.msra.mxu0 %v1681_v23  ;;  %v194_v20 = vrot.slane %v189_v18, %v193_v17  ;;  %v198_v21 = vrot.slane %v189_v18, %v197_v19 }
  0xaa   :  { %832 = vmatprep.subr.bf16.mxu0 %v1689_v24 }
  0xab   :  { %1129 = vmatpush1.bf16.msra.mxu1 %v1767_v45  ;;  %v1799_v45 = vld [vmem:[#allocation8 + $0x48] sm:$0xff]  }
  0xac   :  { %1130 = vmatprep.subr.bf16.mxu1 %v1772_v46  ;;  %v1800_v46 = vld [vmem:[#allocation8 + $0x8] sm:$0xff]  }
  0xad   :  { %833 = vmatpush1.bf16.msra.mxu0 %v1687_v27 }
  0xae   :  { %834 = vmatprep.subr.bf16.mxu0 %v1695_v28 }
  0xaf   :  { %1131 = vmatpush1.bf16.msra.mxu1 %v1770_v49  ;;  %v1803_v49 = vld [vmem:[#allocation8 + $0x58] sm:$0xff]  }
  0xb0   :  { %1132 = vmatprep.subr.bf16.mxu1 %v1775_v50  ;;  %v1804_v50 = vld [vmem:[#allocation8 + $0x18] sm:$0xff]  }
  0xb1   :  { %835 = vmatpush1.bf16.msra.mxu0 %v1693_v31 }
  0xb2   :  { %836 = vmatprep.subr.bf16.mxu0 %v1701_v32 }
  0xb3   :  { %1133 = vmatpush1.bf16.msra.mxu1 %v1773_v53  ;;  %v1807_v53 = vld [vmem:[#allocation8 + $0x68] sm:$0xff]  }
  0xb4   :  { %1134 = vmatprep.subr.bf16.mxu1 %v1778_v54  ;;  %v1808_v54 = vld [vmem:[#allocation8 + $0x28] sm:$0xff]  }
  0xb5   :  { %837 = vmatpush1.bf16.msra.mxu0 %v1699_v35 }
  0xb6   :  { %838 = vmatprep.subr.bf16.mxu0 %v1707_v36 }
  0xb7   :  { %1135 = vmatpush1.bf16.msra.mxu1 %v1776_v57  ;;  %v1811_v57 = vld [vmem:[#allocation8 + $0x78] sm:$0xff]  }
  0xb8   :  { %1136 = vmatprep.subr.bf16.mxu1 %v1781_v59  ;;  %v944_v59 = vld [vmem:[%s2079_s4] sm:$0x3] }
  0xb9   :  { %839 = vmatpush1.bf16.msra.mxu0 %v1705_v39 }
  0xba   :  { %840 = vmatprep.subr.bf16.mxu0 %v1713_v40 }
  0xbb   :  { %1137 = vmatpush1.bf16.msra.mxu1 %v1779_v61  ;;  %v953_v61 = vrot.slane %v944_v59, %v197_v19 }
  0xbc   :  { %1138 = vmatprep.subr.bf16.mxu1 %v1784_v62 }
  0xbd   :  { %841 = vmatpush1.bf16.msra.mxu0 %v1711_v43 }
  0xbe   :  { %842 = vmatprep.subr.bf16.mxu0 %v1719_v44  ;;  %v1798_v44 = vld [vmem:[#allocation8] sm:$0xff]  }
  0xbf   :  { %1139 = vmatpush1.bf16.msra.mxu1 %v1782_v0 }
  0xc0   :  { %1140 = vmatprep.subr.bf16.mxu1 %v1787_v3 }
  0xc1   :  { %843 = vmatpush1.bf16.msra.mxu0 %v1717_v47  ;;  %v1801_v47 = vld [vmem:[#allocation8 + $0x50] sm:$0xff]  }
  0xc2   :  { %844 = vmatprep.subr.bf16.mxu0 %v1725_v48  ;;  %v1802_v48 = vld [vmem:[#allocation8 + $0x10] sm:$0xff]  }
  0xc3   :  { %1141 = vmatpush1.bf16.msra.mxu1 %v1785_v2 }
  0xc4   :  { %1142 = vmatprep.subr.bf16.mxu1 %v1790_v4 }
  0xc5   :  { %845 = vmatpush1.bf16.msra.mxu0 %v1723_v51  ;;  %v1805_v51 = vld [vmem:[#allocation8 + $0x60] sm:$0xff]  }
  0xc6   :  { %846 = vmatprep.subr.bf16.mxu0 %v1731_v52  ;;  %v1806_v52 = vld [vmem:[#allocation8 + $0x20] sm:$0xff]  }
  0xc7   :  { %1143 = vmatpush1.bf16.msra.mxu1 %v1788_v5 }
  0xc8   :  { %1144 = vmatprep.subr.bf16.mxu1 %v1793_v6 }
  0xc9   :  { %847 = vmatpush1.bf16.msra.mxu0 %v1729_v55  ;;  %v1809_v55 = vld [vmem:[#allocation8 + $0x70] sm:$0xff]  }
  0xca   :  { %859 = vmatprep.subr.bf16.mxu0 %v1740_v56  ;;  %v1810_v56 = vld [vmem:[#allocation8 + $0x30] sm:$0xff]  }
  0xcb   :  { %1145 = vmatpush1.bf16.msra.mxu1 %v1791_v7 }
  0xcc   :  { %849 = vmatmul.mubr.bf16.vlgmr.msra.gmra.mrb[0].mxu0 %v1733_v58  ;;  %1146 = vmatprep.subr.bf16.mxu1 %v1796_v8  ;;  %v1812_v58 = vld [vmem:[#allocation8 + $0x38] sm:$0xff]  }
  0xcd   :  { %860 = vmatpush1.bf16.msra.mxu0 %v1738_v60  ;;  %891 = vmatprep.mubr.bf16.mxu0 %v1941_v63  ;;  %v949_v60 = vrot.slane %v944_v59, %v193_v17  ;;  %v1516_v17 = vld [vmem:[%s2081_s6] ss:$0 sm:$0xff] }
  0xcf   :  { %1147 = vmatpush1.bf16.msra.mxu1 %v1794_v9 }
  0xd0   :  { %1542 = vmatprep.subr.bf16.mxu1 %v1797_v10 }
  0xd8   :  { %1483 = vmatmul.mubr.msk.bf16.vlgmr.msra.gmra.mrb[0].mxu0 %vm726_vm0, %v1748_v1 }
 0x165   :  { %v764_v11 = vpop.f32.mrb[0].mxu1 }
 0x166   :  { %v766_v12 = vpop.f32.mrb[1].mxu1  ;;  %v765_v22 = vadd.f32 %v764_v11, %v194_v20 }
 0x167   :  { %v768_v13 = vpop.f32.mrb[2].mxu1  ;;  %v767_v23 = vadd.f32 %v766_v12, %v198_v21 }
 0x168   :  { %v770_v14 = vpop.f32.mrb[3].mxu1  ;;  %v769_v25 = vadd.f32 %v768_v13, %v194_v20 }
 0x169   :  { %v771_v28 = vadd.f32 %v770_v14, %v198_v21 }
 0x1ab   :  { %v893_v24 = vpop.f32.mrb[0].mxu0 }
 0x1ac   :  { %v1565_v26 = vadd.f32 %v893_v24, %v765_v22  ;;  %v895_v27 = vpop.f32.mrb[1].mxu0 }
 0x1ad   :  { %v1567_v29 = vadd.f32 %v895_v27, %v767_v23  ;;  %v897_v30 = vpop.f32.mrb[2].mxu0 }
 0x1ae   :  { %v902_v31 = vmul.f32 0.01, %v1565_v26  ;;  %v1569_v32 = vadd.f32 %v897_v30, %v769_v25  ;;  %v899_v33 = vpop.f32.mrb[3].mxu0 }
 0x1af   :  { %v903_v34 = vmul.f32 0.01, %v1567_v29  ;;  %v1571_v35 = vadd.f32 %v899_v33, %v771_v28 }
 0x1b0   :  { %v904_v36 = vmul.f32 0.01, %v1569_v32  ;;  %v906_v38 = vmax.f32 %v1565_v26, %v902_v31 }
 0x1b1   :  { %v905_v37 = vmul.f32 0.01, %v1571_v35  ;;  %v907_v40 = vmax.f32 %v1567_v29, %v903_v34 }
 0x1b2   :  { %v908_v39 = vmax.f32 %v1569_v32, %v904_v36 }
 0x1b3   :  { %v909_v41 = vmax.f32 %v1571_v35, %v905_v37 }
 0x1b4   :  { %v910_v42 = vpack.c.bf16 %v908_v39, %v906_v38 }
 0x1b5   :  { %v911_v43 = vpack.c.bf16 %v909_v41, %v907_v40 }
 0x1b7   :  { %1148 = vmatprep.mubr.bf16.mxu1 %v911_v43 }
 0x1b8   :  { %1149 = vmatmul.mubr.bf16.vlgmr.msra.gmra.mrb[4].mxu1 %v910_v42 }
 0x1b9   :  { %1543 = vmatpush3.bf16.msra.mxu1 %v1798_v44 }
 0x1ba   :  { %1544 = vmatprep.subr.bf16.mxu1 %v1799_v45 }
 0x1bd   :  { %1545 = vmatpush3.bf16.msra.mxu1 %v1800_v46 }
 0x1be   :  { %1546 = vmatprep.subr.bf16.mxu1 %v1801_v47 }
 0x1c1   :  { %1547 = vmatpush3.bf16.msra.mxu1 %v1802_v48 }
 0x1c2   :  { %1548 = vmatprep.subr.bf16.mxu1 %v1803_v49 }
 0x1c5   :  { %1549 = vmatpush3.bf16.msra.mxu1 %v1804_v50 }
 0x1c6   :  { %1550 = vmatprep.subr.bf16.mxu1 %v1805_v51 }
 0x1c9   :  { %1551 = vmatpush3.bf16.msra.mxu1 %v1806_v52 }
 0x1ca   :  { %1552 = vmatprep.subr.bf16.mxu1 %v1807_v53 }
 0x1cd   :  { %1553 = vmatpush3.bf16.msra.mxu1 %v1808_v54 }
 0x1ce   :  { %1554 = vmatprep.subr.bf16.mxu1 %v1809_v55 }
 0x1d1   :  { %1555 = vmatpush3.bf16.msra.mxu1 %v1810_v56 }
 0x1d2   :  { %1556 = vmatprep.subr.bf16.mxu1 %v1811_v57 }
 0x1d5   :  { %1557 = vmatpush3.bf16.msra.mxu1 %v1812_v58 }
 0x28b   :  { %v1150_v62 = vpop.f32.mrb[4].mxu1 }
 0x28c   :  { %v1151_v63 = vadd.f32 %v1150_v62, %v949_v60  ;;  %v1152_v0 = vpop.f32.mrb[5].mxu1 }
 0x28d   :  { %v1153_v1 = vadd.f32 %v1152_v0, %v953_v61  ;;  %v1154_v2 = vpop.f32.mrb[6].mxu1 }
 0x28e   :  { %v1159_v3 = vmul.f32 0.01, %v1151_v63  ;;  %v1155_v4 = vadd.f32 %v1154_v2, %v949_v60  ;;  %v1156_v5 = vpop.f32.mrb[7].mxu1 }
 0x28f   :  { %v1160_v6 = vmul.f32 0.01, %v1153_v1  ;;  %v1157_v7 = vadd.f32 %v1156_v5, %v953_v61 }
 0x290   :  { %v1161_v8 = vmul.f32 0.01, %v1155_v4  ;;  %v1163_v10 = vmax.f32 %v1151_v63, %v1159_v3 }
 0x291   :  { %v1162_v9 = vmul.f32 0.01, %v1157_v7  ;;  %v1164_v12 = vmax.f32 %v1153_v1, %v1160_v6 }
 0x292   :  { %v1165_v11 = vmax.f32 %v1155_v4, %v1161_v8 }
 0x293   :  { %v1166_v13 = vmax.f32 %v1157_v7, %v1162_v9 }
 0x294   :  { %v1167_v14 = vpack.c.bf16 %v1165_v11, %v1163_v10 }
 0x295   :  { %v1168_v15 = vpack.c.bf16 %v1166_v13, %v1164_v12 }
 0x297   :  { %1336 = vmatprep.mubr.bf16.mxu1 %v1168_v15 }
 0x298   :  { %1337 = vmatmul.mubr.bf16.vlgmr.msra.gmra.mrb[8].mxu1 %v1167_v14 }
 0x36b   :  { %v1558_v16 = vpop.f32.mrb[8].mxu1 }
 0x36c   :  { %v1559_v18 = vpop.f32.mrb[9].mxu1 }
 0x36d   :  { %v1560_v19 = vadd.f32 %v1559_v18, %v1558_v16  ;;  %v1561_v20 = vpop.f32.mrb[10].mxu1 }
 0x36e   :  { %v1562_v21 = vpop.f32.mrb[11].mxu1 }
 0x36f   :  { %v1339_v22 = vadd.f32 %v1560_v19, %v1516_v17  ;;  %v1563_v23 = vadd.f32 %v1562_v21, %v1561_v20 }
 0x371   :  { %v1345_v24 = vmul.f32 0.01, %v1339_v22  ;;  %v1342_v25 = vadd.f32 %v1563_v23, %v1516_v17 }
 0x373   :  { %v1346_v26 = vmul.f32 0.01, %v1342_v25  ;;  %v1347_v27 = vmax.f32 %v1339_v22, %v1345_v24 }
 0x375   :  { %v1348_v28 = vmax.f32 %v1342_v25, %v1346_v26 }
 0x377   :  { %v1540_v29 = vpack.c.bf16 %v1348_v28, %v1347_v27 }
 0x379   :  { %1541 = vst [vmem:[#allocation10] sm:$0xff] %v1540_v29  }
 0x37a   :  { %1912 = shalt.err (!%p1909_p8)
}
 0x37b   :  { %s1913_s14 = scalar_lea.hbm %s2082_s7, 128 }
 0x37c   :  { %p1914_p9 = scmp.ne.s32.totalorder %s2082_s7, %s1913_s14  ;;  %p1917_p10 = scmp.lt.u32.totalorder %s1913_s14, %s2082_s7 }
 0x37e   :  { %p1919_p11 = pnand %p1917_p10, %p1914_p9 }
 0x380   :  { %1922 = shalt.err (!%p1919_p11)
}
 0x381   :  { %1370 = dma.vmem_to_hbm [thread:$0]  %s1365_s9, 128, %s2082_s7, [#allocation4], %s1939_s3, %s1939_s3, %s1940_s11  }
 0x382   :  { %1929 = dma.done.wait [#allocation4], 128  }
 0x383   :  { %1930 = vsyncadd [#allocation4], 4294967168 }
 0x384   :  { %1374 = vsyncpa [#allocation3], 1 }
 0x385   :  { %1375 = vsyncpa [#allocation6], 1 }
 0x386   :  { %1376 = vsyncpa [#allocation9], 1 }
 0x387   :  { %1377 = vsyncpa [#allocation4], 1 }

</bundles_post_ra>
